<compile_context>
chip_gen: v7x
topology: tpu7x:2x2x1
jax: 0.10.0
libtpu: 0.0.40
codegen_flags: <defaults>
</compile_context>

<pallas_src>
import functools

import jax
import jax.numpy as jnp
from jax.experimental import pallas as pl
from jax.experimental.pallas import tpu as pltpu


def _round_up(x, m):
    return ((x + m - 1) // m) * m


def _leaky_relu(x, slope=0.01):
    return jnp.where(x > 0, x, slope * x)


def _layer_norm_fused(h, gamma, beta, eps=1e-5):
    # Single pass statistics: both reductions issue without a data dependency.
    inv_n = 1.0 / h.shape[-1]
    s1 = jnp.sum(h, axis=-1, keepdims=True)
    s2 = jnp.sum(h * h, axis=-1, keepdims=True)
    mu = s1 * inv_n
    var = jnp.maximum(s2 * inv_n - mu * mu, 0.0)
    return (h - mu) * jax.lax.rsqrt(var + eps) * gamma + beta


def policy_kernel(x_ref, w1_ref, p1_ref, w2_ref, p2_ref, w3b_ref, out_ref):
    """One batch tile: fused 3-layer MLP, all operands VMEM resident."""
    H = w2_ref.shape[1]
    x = x_ref[...]

    # --- Layer 1: Linear -> LeakyReLU -> LayerNorm ---
    p1 = p1_ref[...]                       # rows: [b1; gamma1; beta1]
    h = jnp.dot(x, w1_ref[...], preferred_element_type=jnp.float32) + p1[0:1, :]
    h = _leaky_relu(h)
    h = _layer_norm_fused(h, p1[1:2, :], p1[2:3, :])

    # --- Layer 2: Linear -> LeakyReLU -> LayerNorm ---
    p2 = p2_ref[...]                       # rows: [b2; gamma2; beta2]
    h = jnp.dot(h, w2_ref[...], preferred_element_type=jnp.float32) + p2[0:1, :]
    h = _leaky_relu(h)
    h = _layer_norm_fused(h, p2[1:2, :], p2[2:3, :])

    # --- Output layer: Linear (lane-padded to 128 output columns) ---
    w3 = w3b_ref[0:H, :]                   # (H, A_pad)   static, tile-aligned
    b3 = w3b_ref[H:H + 1, :]               # (1, A_pad)   bias folded into same DMA
    out_ref[...] = (jnp.dot(h, w3, preferred_element_type=jnp.float32)
                    + b3).astype(out_ref.dtype)


def policy_forward(state, packed, action_size, *, max_tile_b=512):
    """state: (B, state_size) f32.  packed: dict from pack_params()."""
    B, S = state.shape
    H = packed["w1"].shape[1]
    Hp = packed["w3b"].shape[0]            # H + 8 (bias row + pad rows)
    A_pad = packed["w3b"].shape[1]         # action_size padded to 128 lanes

    # Batch tile: multiple of 8 (f32 sublane), capped so VMEM stays comfortable
    # on every generation (v7x has 64 MiB physical / 32 MiB scoped default).
    TB = min(max_tile_b, _round_up(B, 8))
    Bp = _round_up(B, TB)
    if Bp != B:
        state = jnp.pad(state, ((0, Bp - B), (0, 0)))

    grid = (Bp // TB,)

    out = pl.pallas_call(
        policy_kernel,
        out_shape=jax.ShapeDtypeStruct((Bp, A_pad), jnp.float32),
        grid_spec=pltpu.PrefetchScalarGridSpec(
            num_scalar_prefetch=0,
            grid=grid,
            in_specs=[
                pl.BlockSpec((TB, S), lambda i: (i, 0)),     # activations: tiled over batch
                pl.BlockSpec((S, H), lambda i: (0, 0)),      # weights: VMEM resident
                pl.BlockSpec((3, H), lambda i: (0, 0)),      # packed b1/g1/be1
                pl.BlockSpec((H, H), lambda i: (0, 0)),
                pl.BlockSpec((3, H), lambda i: (0, 0)),      # packed b2/g2/be2
                pl.BlockSpec((Hp, A_pad), lambda i: (0, 0)), # packed w3 + b3, lane-padded
            ],
            out_specs=pl.BlockSpec((TB, A_pad), lambda i: (i, 0)),
        ),
        compiler_params=pltpu.CompilerParams(
            dimension_semantics=("parallel",)),   # megacore sharding on v7x
    )(state, packed["w1"], packed["p1"], packed["w2"], packed["p2"], packed["w3b"])

    # Strip batch padding and the lane padding of the output projection.
    return out[:B, :action_size]


def init_params(key, state_size, action_size, hidden_size):
    """Deterministic synthetic init (PyTorch-style uniform fan-in bounds)."""
    ks = jax.random.split(key, 6)

    def linear(kw, kb, fan_in, fan_out):
        bound = 1.0 / jnp.sqrt(fan_in)
        w = jax.random.uniform(kw, (fan_in, fan_out), jnp.float32, -bound, bound)
        b = jax.random.uniform(kb, (1, fan_out), jnp.float32, -bound, bound)
        return w, b

    w1, b1 = linear(ks[0], ks[1], state_size, hidden_size)
    w2, b2 = linear(ks[2], ks[3], hidden_size, hidden_size)
    w3, b3 = linear(ks[4], ks[5], hidden_size, action_size)

    return {
        "w1": w1, "b1": b1,
        "g1": jnp.ones((1, hidden_size), jnp.float32),
        "be1": jnp.zeros((1, hidden_size), jnp.float32),
        "w2": w2, "b2": b2,
        "g2": jnp.ones((1, hidden_size), jnp.float32),
        "be2": jnp.zeros((1, hidden_size), jnp.float32),
        "w3": w3, "b3": b3,
    }


def pack_params(p):
    """One-time repack of the natural params into the kernel's DMA-friendly layout."""
    H = p["w1"].shape[1]
    A = p["w3"].shape[1]
    A_pad = _round_up(A, 128)              # lane-dense output store
    Hp = H + 8                             # bias row + sublane padding

    p1 = jnp.concatenate([p["b1"], p["g1"], p["be1"]], axis=0)   # (3, H)
    p2 = jnp.concatenate([p["b2"], p["g2"], p["be2"]], axis=0)   # (3, H)

    w3b = jnp.zeros((Hp, A_pad), jnp.float32)
    w3b = w3b.at[:H, :A].set(p["w3"])
    w3b = w3b.at[H:H + 1, :A].set(p["b3"])

    return {"w1": p["w1"], "p1": p1, "w2": p["w2"], "p2": p2, "w3b": w3b}


def policy_reference(state, p):
    """Pure-JAX reference for correctness check (matches nn.LayerNorm/LeakyReLU)."""
    h = state @ p["w1"] + p["b1"]
    h = jnp.where(h > 0, h, 0.01 * h)
    mu = h.mean(-1, keepdims=True)
    var = ((h - mu) ** 2).mean(-1, keepdims=True)
    h = (h - mu) / jnp.sqrt(var + 1e-5) * p["g1"] + p["be1"]

    h = h @ p["w2"] + p["b2"]
    h = jnp.where(h > 0, h, 0.01 * h)
    mu = h.mean(-1, keepdims=True)
    var = ((h - mu) ** 2).mean(-1, keepdims=True)
    h = (h - mu) / jnp.sqrt(var + 1e-5) * p["g2"] + p["be2"]

    return h @ p["w3"] + p["b3"]


if __name__ == "__main__":
    key = jax.random.PRNGKey(0)
    k_state, k_params = jax.random.split(key)

    # Small shapes consistent with the module's forward.
    batch, state_size, action_size, hidden_size = 8, 16, 8, 32

    params = init_params(k_params, state_size, action_size, hidden_size)
    packed = pack_params(params)
    state = jax.random.normal(k_state, (batch, state_size), jnp.float32)

    out = policy_forward(state, packed, action_size)
    out = jax.block_until_ready(out)

    ref = policy_reference(state, params)
    assert out.shape == (batch, action_size)
    assert jnp.allclose(out, ref, atol=1e-4, rtol=1e-4), "mismatch vs reference"

    print("KERNEL_OK")
</pallas_src>

<mosaic_0001>
module attributes {stable_mosaic.version = 11 : i64} {
  func.func @policy_kernel(%arg0: i32, %arg1: memref<8x16xf32, #tpu.memory_space<vmem>>, %arg2: memref<16x32xf32, #tpu.memory_space<vmem>>, %arg3: memref<3x32xf32, #tpu.memory_space<vmem>>, %arg4: memref<32x32xf32, #tpu.memory_space<vmem>>, %arg5: memref<3x32xf32, #tpu.memory_space<vmem>>, %arg6: memref<40x128xf32, #tpu.memory_space<vmem>>, %arg7: memref<8x128xf32, #tpu.memory_space<vmem>>) attributes {dimension_semantics = [#tpu.dimension_semantics<parallel>], iteration_bounds = array<i64: 1>, scalar_prefetch = 0 : i64, scratch_operands = 0 : i64, tpu.core_type = #tpu.core_type<tc>, window_params = [{transform_indices = @transform_0, window_bounds = array<i64: 8, 16>}, {pipeline_mode = #tpu.pipeline_mode<synchronous>, transform_indices = @transform_1, window_bounds = array<i64: 16, 32>}, {pipeline_mode = #tpu.pipeline_mode<synchronous>, transform_indices = @transform_2, window_bounds = array<i64: 3, 32>}, {pipeline_mode = #tpu.pipeline_mode<synchronous>, transform_indices = @transform_3, window_bounds = array<i64: 32, 32>}, {pipeline_mode = #tpu.pipeline_mode<synchronous>, transform_indices = @transform_4, window_bounds = array<i64: 3, 32>}, {pipeline_mode = #tpu.pipeline_mode<synchronous>, transform_indices = @transform_5, window_bounds = array<i64: 40, 128>}, {transform_indices = @transform_6, window_bounds = array<i64: 8, 128>}]} {
    %c0 = arith.constant 0 : index
    %c0_0 = arith.constant 0 : index
    %0 = vector.load %arg1[%c0, %c0_0] : memref<8x16xf32, #tpu.memory_space<vmem>>, vector<8x16xf32>
    %c0_1 = arith.constant 0 : index
    %c0_2 = arith.constant 0 : index
    %1 = vector.load %arg3[%c0_1, %c0_2] : memref<3x32xf32, #tpu.memory_space<vmem>>, vector<3x32xf32>
    %c0_3 = arith.constant 0 : index
    %c0_4 = arith.constant 0 : index
    %2 = vector.load %arg2[%c0_3, %c0_4] : memref<16x32xf32, #tpu.memory_space<vmem>>, vector<16x32xf32>
    %cst = arith.constant dense<0.000000e+00> : vector<8x32xf32>
    %3 = tpu.matmul %0, %2, %cst {dimension_numbers = #tpu.dot_dimension_numbers<[1], [0], [0], [1], [0, 0, 1, 1], [], []>} : vector<8x16xf32>, vector<16x32xf32>, vector<8x32xf32> -> vector<8x32xf32>
    %4 = vector.extract_strided_slice %1 {offsets = [0, 0], sizes = [1, 32], strides = [1, 1]} : vector<3x32xf32> to vector<1x32xf32>
    %5 = vector.broadcast %4 : vector<1x32xf32> to vector<8x32xf32>
    %6 = arith.addf %3, %5 : vector<8x32xf32>
    %cst_5 = arith.constant 0.000000e+00 : f32
    %7 = vector.broadcast %cst_5 : f32 to vector<8x32xf32>
    %8 = arith.cmpf ogt, %6, %7 : vector<8x32xf32>
    %cst_6 = arith.constant 0.00999999977 : f32
    %9 = vector.broadcast %cst_6 : f32 to vector<8x32xf32>
    %10 = arith.mulf %9, %6 : vector<8x32xf32>
    %11 = arith.select %8, %6, %10 : vector<8x32xi1>, vector<8x32xf32>
    %12 = vector.extract_strided_slice %1 {offsets = [1, 0], sizes = [1, 32], strides = [1, 1]} : vector<3x32xf32> to vector<1x32xf32>
    %13 = vector.extract_strided_slice %1 {offsets = [2, 0], sizes = [1, 32], strides = [1, 1]} : vector<3x32xf32> to vector<1x32xf32>
    %cst_7 = arith.constant dense<0.000000e+00> : vector<8xf32>
    %14 = vector.multi_reduction <add>, %11, %cst_7 [1] : vector<8x32xf32> to vector<8xf32>
    %15 = vector.shape_cast %14 : vector<8xf32> to vector<8x1xf32>
    %16 = arith.mulf %11, %11 : vector<8x32xf32>
    %cst_8 = arith.constant dense<0.000000e+00> : vector<8xf32>
    %17 = vector.multi_reduction <add>, %16, %cst_8 [1] : vector<8x32xf32> to vector<8xf32>
    %18 = vector.shape_cast %17 : vector<8xf32> to vector<8x1xf32>
    %cst_9 = arith.constant 3.125000e-02 : f32
    %19 = vector.broadcast %cst_9 : f32 to vector<8x1xf32>
    %20 = arith.mulf %15, %19 : vector<8x1xf32>
    %cst_10 = arith.constant 3.125000e-02 : f32
    %21 = vector.broadcast %cst_10 : f32 to vector<8x1xf32>
    %22 = arith.mulf %18, %21 : vector<8x1xf32>
    %23 = arith.mulf %20, %20 : vector<8x1xf32>
    %24 = arith.subf %22, %23 : vector<8x1xf32>
    %cst_11 = arith.constant 0.000000e+00 : f32
    %25 = vector.broadcast %cst_11 : f32 to vector<8x1xf32>
    %26 = arith.maximumf %24, %25 : vector<8x1xf32>
    %27 = vector.broadcast %20 : vector<8x1xf32> to vector<8x32xf32>
    %28 = arith.subf %11, %27 : vector<8x32xf32>
    %cst_12 = arith.constant 9.99999974E-6 : f32
    %29 = vector.broadcast %cst_12 : f32 to vector<8x1xf32>
    %30 = arith.addf %26, %29 : vector<8x1xf32>
    %31 = math.rsqrt %30 : vector<8x1xf32>
    %32 = vector.broadcast %31 : vector<8x1xf32> to vector<8x32xf32>
    %33 = arith.mulf %28, %32 : vector<8x32xf32>
    %34 = vector.broadcast %12 : vector<1x32xf32> to vector<8x32xf32>
    %35 = arith.mulf %33, %34 : vector<8x32xf32>
    %36 = vector.broadcast %13 : vector<1x32xf32> to vector<8x32xf32>
    %37 = arith.addf %35, %36 : vector<8x32xf32>
    %c0_13 = arith.constant 0 : index
    %c0_14 = arith.constant 0 : index
    %38 = vector.load %arg5[%c0_13, %c0_14] : memref<3x32xf32, #tpu.memory_space<vmem>>, vector<3x32xf32>
    %c0_15 = arith.constant 0 : index
    %c0_16 = arith.constant 0 : index
    %39 = vector.load %arg4[%c0_15, %c0_16] : memref<32x32xf32, #tpu.memory_space<vmem>>, vector<32x32xf32>
    %cst_17 = arith.constant dense<0.000000e+00> : vector<8x32xf32>
    %40 = tpu.matmul %37, %39, %cst_17 {dimension_numbers = #tpu.dot_dimension_numbers<[1], [0], [0], [1], [0, 0, 1, 1], [], []>} : vector<8x32xf32>, vector<32x32xf32>, vector<8x32xf32> -> vector<8x32xf32>
    %41 = vector.extract_strided_slice %38 {offsets = [0, 0], sizes = [1, 32], strides = [1, 1]} : vector<3x32xf32> to vector<1x32xf32>
    %42 = vector.broadcast %41 : vector<1x32xf32> to vector<8x32xf32>
    %43 = arith.addf %40, %42 : vector<8x32xf32>
    %cst_18 = arith.constant 0.000000e+00 : f32
    %44 = vector.broadcast %cst_18 : f32 to vector<8x32xf32>
    %45 = arith.cmpf ogt, %43, %44 : vector<8x32xf32>
    %cst_19 = arith.constant 0.00999999977 : f32
    %46 = vector.broadcast %cst_19 : f32 to vector<8x32xf32>
    %47 = arith.mulf %46, %43 : vector<8x32xf32>
    %48 = arith.select %45, %43, %47 : vector<8x32xi1>, vector<8x32xf32>
    %49 = vector.extract_strided_slice %38 {offsets = [1, 0], sizes = [1, 32], strides = [1, 1]} : vector<3x32xf32> to vector<1x32xf32>
    %50 = vector.extract_strided_slice %38 {offsets = [2, 0], sizes = [1, 32], strides = [1, 1]} : vector<3x32xf32> to vector<1x32xf32>
    %cst_20 = arith.constant dense<0.000000e+00> : vector<8xf32>
    %51 = vector.multi_reduction <add>, %48, %cst_20 [1] : vector<8x32xf32> to vector<8xf32>
    %52 = vector.shape_cast %51 : vector<8xf32> to vector<8x1xf32>
    %53 = arith.mulf %48, %48 : vector<8x32xf32>
    %cst_21 = arith.constant dense<0.000000e+00> : vector<8xf32>
    %54 = vector.multi_reduction <add>, %53, %cst_21 [1] : vector<8x32xf32> to vector<8xf32>
    %55 = vector.shape_cast %54 : vector<8xf32> to vector<8x1xf32>
    %cst_22 = arith.constant 3.125000e-02 : f32
    %56 = vector.broadcast %cst_22 : f32 to vector<8x1xf32>
    %57 = arith.mulf %52, %56 : vector<8x1xf32>
    %cst_23 = arith.constant 3.125000e-02 : f32
    %58 = vector.broadcast %cst_23 : f32 to vector<8x1xf32>
    %59 = arith.mulf %55, %58 : vector<8x1xf32>
    %60 = arith.mulf %57, %57 : vector<8x1xf32>
    %61 = arith.subf %59, %60 : vector<8x1xf32>
    %cst_24 = arith.constant 0.000000e+00 : f32
    %62 = vector.broadcast %cst_24 : f32 to vector<8x1xf32>
    %63 = arith.maximumf %61, %62 : vector<8x1xf32>
    %64 = vector.broadcast %57 : vector<8x1xf32> to vector<8x32xf32>
    %65 = arith.subf %48, %64 : vector<8x32xf32>
    %cst_25 = arith.constant 9.99999974E-6 : f32
    %66 = vector.broadcast %cst_25 : f32 to vector<8x1xf32>
    %67 = arith.addf %63, %66 : vector<8x1xf32>
    %68 = math.rsqrt %67 : vector<8x1xf32>
    %69 = vector.broadcast %68 : vector<8x1xf32> to vector<8x32xf32>
    %70 = arith.mulf %65, %69 : vector<8x32xf32>
    %71 = vector.broadcast %49 : vector<1x32xf32> to vector<8x32xf32>
    %72 = arith.mulf %70, %71 : vector<8x32xf32>
    %73 = vector.broadcast %50 : vector<1x32xf32> to vector<8x32xf32>
    %74 = arith.addf %72, %73 : vector<8x32xf32>
    %c0_26 = arith.constant 0 : index
    %c0_27 = arith.constant 0 : index
    %75 = vector.load %arg6[%c0_26, %c0_27] : memref<40x128xf32, #tpu.memory_space<vmem>>, vector<32x128xf32>
    %c32 = arith.constant 32 : index
    %c0_28 = arith.constant 0 : index
    %76 = vector.load %arg6[%c32, %c0_28] : memref<40x128xf32, #tpu.memory_space<vmem>>, vector<1x128xf32>
    %cst_29 = arith.constant dense<0.000000e+00> : vector<8x128xf32>
    %77 = tpu.matmul %74, %75, %cst_29 {dimension_numbers = #tpu.dot_dimension_numbers<[1], [0], [0], [1], [0, 0, 1, 1], [], []>} : vector<8x32xf32>, vector<32x128xf32>, vector<8x128xf32> -> vector<8x128xf32>
    %78 = vector.broadcast %76 : vector<1x128xf32> to vector<8x128xf32>
    %79 = arith.addf %77, %78 : vector<8x128xf32>
    %c0_30 = arith.constant 0 : index
    %c0_31 = arith.constant 0 : index
    %80 = vector.load %arg7[%c0_30, %c0_31] : memref<8x128xf32, #tpu.memory_space<vmem>>, vector<8x128xf32>
    tpu.vector_store %arg7[%c0_30, %c0_31], %79 {strides = array<i32>} : memref<8x128xf32, #tpu.memory_space<vmem>>, vector<8x128xf32>,
    return
  }
  func.func @transform_0(%arg0: i32) -> (i32, i32) {
    %c0_i32 = arith.constant 0 : i32
    %c0_i32_0 = arith.constant 0 : i32
    return %arg0, %c0_i32 : i32, i32
  }
  func.func @transform_1(%arg0: i32) -> (i32, i32) {
    %c0_i32 = arith.constant 0 : i32
    %c0_i32_0 = arith.constant 0 : i32
    %c0_i32_1 = arith.constant 0 : i32
    return %c0_i32, %c0_i32_0 : i32, i32
  }
  func.func @transform_2(%arg0: i32) -> (i32, i32) {
    %c0_i32 = arith.constant 0 : i32
    %c0_i32_0 = arith.constant 0 : i32
    %c0_i32_1 = arith.constant 0 : i32
    return %c0_i32, %c0_i32_0 : i32, i32
  }
  func.func @transform_3(%arg0: i32) -> (i32, i32) {
    %c0_i32 = arith.constant 0 : i32
    %c0_i32_0 = arith.constant 0 : i32
    %c0_i32_1 = arith.constant 0 : i32
    return %c0_i32, %c0_i32_0 : i32, i32
  }
  func.func @transform_4(%arg0: i32) -> (i32, i32) {
    %c0_i32 = arith.constant 0 : i32
    %c0_i32_0 = arith.constant 0 : i32
    %c0_i32_1 = arith.constant 0 : i32
    return %c0_i32, %c0_i32_0 : i32, i32
  }
  func.func @transform_5(%arg0: i32) -> (i32, i32) {
    %c0_i32 = arith.constant 0 : i32
    %c0_i32_0 = arith.constant 0 : i32
    %c0_i32_1 = arith.constant 0 : i32
    return %c0_i32, %c0_i32_0 : i32, i32
  }
  func.func @transform_6(%arg0: i32) -> (i32, i32) {
    %c0_i32 = arith.constant 0 : i32
    %c0_i32_0 = arith.constant 0 : i32
    return %arg0, %c0_i32 : i32, i32
  }
}

</mosaic_0001>

<bundles_post_ra>
// kernel: tpu_custom_call.1
= control target key start
LH: loop header
LB: loop body
LE: loop exit
PB: predicated region body
PF: predicated region fallthrough
CT: control target
= control target key end

     0   :  { %11 = vsyncpa [#allocation3], 0  ;;  %s729_s0 = inlined_call_operand.hbm [shape: f32[8,16], index: 0, kind: input, shape index: {}]   ;;  %s730_s1 = inlined_call_operand.hbm [shape: f32[16,32], index: 1, kind: input, shape index: {}]   ;;  %s731_s2 = inlined_call_operand.vmem [shape: f32[3,32], index: 2, kind: input, shape index: {}]   ;;  %s732_s3 = inlined_call_operand.hbm [shape: f32[32,32], index: 3, kind: input, shape index: {}]   ;;  %s733_s4 = inlined_call_operand.vmem [shape: f32[3,32], index: 4, kind: input, shape index: {}]   ;;  %s734_s5 = inlined_call_operand.hbm [shape: f32[40,128], index: 5, kind: input, shape index: {}]   ;;  %s735_s6 = inlined_call_operand.hbm [shape: f32[8,128], index: 6, kind: output, shape index: {}]  }
   0x1   :  { %12 = vsyncpa [#allocation6], 0 }
   0x2   :  { %13 = vsyncpa [#allocation9], 0 }
   0x3   :  { %14 = vsyncpa [#allocation4], 0  ;;  %s593_s21 = smov [#allocation5]   ;;  %s475_s25 = scalar_lea.hbm %s730_s1, 256 }
   0x4   :  { %s30_s22 = sshll.u32 %s593_s21, 4  ;;  %p476_p0 = scmp.ne.s32.totalorder %s730_s1, %s475_s25  ;;  %s31_s22 = int_to_ptr.vmem [resolvable:$true] %s30_s22 }
   0x5   :  { %p479_p1 = scmp.lt.u32.totalorder %s475_s25, %s730_s1 }
   0x7   :  { %p481_p2 = pnand %p479_p1, %p476_p0 }
   0x9   :  { %484 = shalt.err (!%p481_p2)
}
   0xa   :  { %s485_s30 = scalar_lea.vmem %s31_s22, 256  ;;  %p490_p4 = scmp.lt.s32.totalorder %s31_s22, %s31_s22 }
   0xb   :  { %p486_p3 = scmp.ne.s32.totalorder %s31_s22, %s485_s30  ;;  %p491_p5 = scmp.lt.s32.totalorder %s485_s30, %s485_s30 }
   0xd   :  { %p492_p6 = por %p491_p5, %p490_p4 }
   0xf   :  { %p493_p7 = pnand %p492_p6, %p486_p3 }
  0x11   :  { %496 = shalt.err (!%p493_p7)
}
  0x12   :  { %s594_s7 = smov 128   ;;  %s595_s8 = smov 8  }
  0x13   :  { %36 = dma.hbm_to_vmem [thread:$0]  %s730_s1, 256, %s31_s22, [#allocation6], %s594_s7, %s594_s7, %s595_s8  }
  0x14   :  { %s596_s11 = smov [#allocation2]   ;;  %s597_s13 = smov [#allocation7]  }
  0x15   :  { %s21_s12 = sshll.u32 %s596_s11, 4  ;;  %s44_s14 = sshll.u32 %s597_s13, 4  ;;  %s22_s12 = int_to_ptr.vmem [resolvable:$true] %s21_s12  ;;  %s45_s14 = int_to_ptr.vmem [resolvable:$true] %s44_s14 }
  0x16   :  { %s497_s17 = scalar_lea.hbm %s729_s0, 128 }
  0x17   :  { %p498_p8 = scmp.ne.s32.totalorder %s729_s0, %s497_s17  ;;  %p501_p9 = scmp.lt.u32.totalorder %s497_s17, %s729_s0 }
  0x19   :  { %p503_p10 = pnand %p501_p9, %p498_p8 }
  0x1b   :  { %506 = shalt.err (!%p503_p10)
}
  0x1c   :  { %s507_s1 = scalar_lea.vmem %s22_s12, 128  ;;  %p512_p12 = scmp.lt.s32.totalorder %s22_s12, %s22_s12 }
  0x1d   :  { %p508_p11 = scmp.ne.s32.totalorder %s22_s12, %s507_s1  ;;  %p513_p13 = scmp.lt.s32.totalorder %s507_s1, %s507_s1 }
  0x1f   :  { %p514_p0 = por %p513_p13, %p512_p12 }
  0x21   :  { %p515_p1 = pnand %p514_p0, %p508_p11 }
  0x23   :  { %518 = shalt.err (!%p515_p1)
}
  0x24   :  { %24 = dma.hbm_to_vmem [thread:$0]  %s729_s0, 128, %s22_s12, [#allocation3]  }
  0x25   :  { %s519_s26 = scalar_lea.hbm %s732_s3, 512 }
  0x26   :  { %p520_p2 = scmp.ne.s32.totalorder %s732_s3, %s519_s26  ;;  %p523_p3 = scmp.lt.u32.totalorder %s519_s26, %s732_s3 }
  0x28   :  { %p525_p4 = pnand %p523_p3, %p520_p2 }
  0x2a   :  { %528 = shalt.err (!%p525_p4)
}
  0x2b   :  { %s529_s9 = scalar_lea.vmem %s45_s14, 512  ;;  %p534_p6 = scmp.lt.s32.totalorder %s45_s14, %s45_s14 }
  0x2c   :  { %p530_p5 = scmp.ne.s32.totalorder %s45_s14, %s529_s9  ;;  %p535_p7 = scmp.lt.s32.totalorder %s529_s9, %s529_s9 }
  0x2e   :  { %p536_p8 = por %p535_p7, %p534_p6 }
  0x30   :  { %p537_p9 = pnand %p536_p8, %p530_p5 }
  0x32   :  { %540 = shalt.err (!%p537_p9)
}
  0x33   :  { %50 = dma.hbm_to_vmem [thread:$0]  %s732_s3, 512, %s45_s14, [#allocation6], %s594_s7, %s594_s7, %s595_s8  }
  0x34   :  { %s598_s11 = smov [#allocation8]   ;;  %s541_s16 = scalar_lea.hbm %s734_s5, 640 }
  0x35   :  { %s58_s12 = sshll.u32 %s598_s11, 4  ;;  %p542_p10 = scmp.ne.s32.totalorder %s734_s5, %s541_s16  ;;  %s59_s12 = int_to_ptr.vmem [resolvable:$true] %s58_s12 }
  0x36   :  { %p545_p11 = scmp.lt.u32.totalorder %s541_s16, %s734_s5 }
  0x38   :  { %p547_p12 = pnand %p545_p11, %p542_p10 }
  0x3a   :  { %550 = shalt.err (!%p547_p12)
}
  0x3b   :  { %s551_s21 = scalar_lea.vmem %s59_s12, 640  ;;  %p556_p0 = scmp.lt.s32.totalorder %s59_s12, %s59_s12 }
  0x3c   :  { %p552_p13 = scmp.ne.s32.totalorder %s59_s12, %s551_s21  ;;  %p557_p1 = scmp.lt.s32.totalorder %s551_s21, %s551_s21 }
  0x3e   :  { %p558_p2 = por %p557_p1, %p556_p0 }
  0x40   :  { %p559_p3 = pnand %p558_p2, %p552_p13 }
  0x42   :  { %562 = shalt.err (!%p559_p3)
}
  0x43   :  { %64 = dma.hbm_to_vmem [thread:$0]  %s734_s5, 640, %s59_s12, [#allocation9], %s594_s7, %s594_s7, %s595_s8  }
  0x44   :  { %585 = dma.done.wait [#allocation3], 128  }
  0x45   :  { %586 = vsyncadd [#allocation3], 4294967168 }
  0x46   :  { %587 = dma.done.wait [#allocation6], 768  }
  0x47   :  { %588 = vsyncadd [#allocation6], 4294966528 }
  0x48   :  { %589 = dma.done.wait [#allocation9], 640  }
  0x49   :  { %590 = vsyncadd [#allocation9], 4294966656  ;;  %v599_v0 = vmov 0.0|0.0   ;;  %vm600_vm0 = vmmov 0   ;;  %v601_v1 = vmov 0.0   ;;  %v79_v2 = vld [vmem:[#allocation5] sm:$0xff]  ;;  %v81_v6 = vlaneseq }
  0x4a   :  { %446 = vmatprep.subr.bf16.mxu0 %v599_v0  ;;  %421 = vmatprep.mubr.msk.f32.mxu0 %vm600_vm0, %v601_v1  ;;  %v80_v3 = vld [vmem:[#allocation5 + $0x8] sm:$0xff]  ;;  %v77_v5 = vld [vmem:[#allocation2] sm:$0xff]  ;;  %vm85_vm1 = vcmask 130048   ;;  %vm162_vm3 = vcmask 261120   ;;  %v190_v19 = vld [vmem:[#allocation7] sm:$0xff] }
  0x4b   :  { %449 = vmatprep.subr.bf16.mxu1 %v599_v0  ;;  %432 = vmatprep.mubr.msk.f32.mxu1 %vm600_vm0, %v601_v1  ;;  %v447_v4 = vpack.c.bf16 %v80_v3, %v79_v2  ;;  %v698_v7 = vshrl.u32 %v81_v6, 7  ;;  %v78_v9 = vld [vmem:[%s731_s2] sm:$0x7]  ;;  %v192_v21 = vld [vmem:[#allocation7 + $0x10] sm:$0xff]  ;;  %v193_v23 = vld [vmem:[#allocation7 + $0x18] sm:$0xff] }
  0x4c   :  { %v191_v20 = vld [vmem:[#allocation7 + $0x8] sm:$0xff]  ;;  %v453_v24 = vpack.c.bf16 %v193_v23, %v192_v21  ;;  %v300_v52 = vld [vmem:[#allocation8] sm:$0xff]  ;;  %v302_v55 = vld [vmem:[#allocation8 + $0x10] sm:$0xff] }
  0x4d   :  { %448 = vmatpush3.bf16.msra.mxu0 %v447_v4  ;;  %v83_v8 = vsub.s32 0, %v698_v7  ;;  %v450_v22 = vpack.c.bf16 %v191_v20, %v190_v19  ;;  %v181_v33 = vsub.s32 1, %v698_v7  ;;  %v186_v34 = vsub.s32 2, %v698_v7  ;;  %v189_v42 = vld [vmem:[%s733_s4] sm:$0x7]  ;;  %v303_v56 = vld [vmem:[#allocation8 + $0x18] sm:$0xff] }
  0x4e   :  { %455 = vmatprep.subr.bf16.mxu0 %v599_v0  ;;  %v301_v53 = vld [vmem:[#allocation8 + $0x8] sm:$0xff]  ;;  %v459_v57 = vpack.c.bf16 %v303_v56, %v302_v55  ;;  %s602_s4 = smov [#allocation10]  }
  0x4f   :  { %v84_v10 = vrot.slane %v78_v9, %v83_v8  ;;  %451 = vmatpush3.bf16.msra.mxu1 %v450_v22  ;;  %v182_v35 = vrot.slane %v78_v9, %v181_v33  ;;  %v187_v38 = vrot.slane %v78_v9, %v186_v34  ;;  %v197_v43 = vrot.slane %v189_v42, %v83_v8  ;;  %v402_v9 = vld [vmem:[#allocation8 + $0x20] ss:$0 sm:$0xff]  ;;  %s389_s1 = sshll.u32 %s602_s4, 4  ;;  %s390_s1 = int_to_ptr.vmem [resolvable:$true] %s389_s1 }
  0x50   :  { %422 = vmatmul.mubr.msk.f32.vlgmr.msra.gmra.mrb[0].mxu0 %vm85_vm1, %v77_v5  ;;  %452 = vmatprep.subr.bf16.mxu1 %v599_v0  ;;  %v456_v54 = vpack.c.bf16 %v301_v53, %v300_v52  ;;  %v293_v3 = vrot.slane %v189_v42, %v181_v33  ;;  %v298_v6 = vrot.slane %v189_v42, %v186_v34  ;;  %s563_s22 = scalar_lea.vmem %s390_s1, 128  ;;  %p568_p5 = scmp.lt.s32.totalorder %s390_s1, %s390_s1 }
  0x51   :  { %443 = vmatprep.mubr.msk.f32.mxu0 %vm600_vm0, %v601_v1  ;;  %p564_p4 = scmp.ne.s32.totalorder %s390_s1, %s563_s22  ;;  %p569_p6 = scmp.lt.s32.totalorder %s563_s22, %s563_s22 }
  0x52   :  { %457 = vmatpush3.bf16.msra.mxu0 %v456_v54 }
  0x53   :  { %454 = vmatpush3.bf16.msra.mxu1 %v453_v24  ;;  %458 = vmatprep.subr.bf16.mxu0 %v599_v0  ;;  %p570_p7 = por %p569_p6, %p568_p5 }
  0x55   :  { %p571_p8 = pnand %p570_p7, %p564_p4 }
  0x56   :  { %460 = vmatpush3.bf16.msra.mxu0 %v459_v57 }
 0x123   :  { %v155_v11 = vpop.f32.mrb[0].mxu0 }
 0x124   :  { %v156_v12 = vadd.f32 %v155_v11, %v84_v10  ;;  %v423_v13 = vpop.f32.mrb[1].mxu0 }
 0x126   :  { %v160_v14 = vmul.f32 0.01, %v156_v12  ;;  %vm159_vm2 = vcmp.gt.f32.partialorder %v156_v12, 0.0 }
 0x128   :  { %v161_v15 = vsel %vm159_vm2, %v156_v12, %v160_v14 }
 0x129   :  { %v163_v16 = vsel %vm162_vm3, %v161_v15, 0.0  ;;  %v166_v17 = vmul.f32 %v161_v15, %v161_v15 }
 0x12a   :  { %164 = vadd.xlane.f32.xlu0 %v163_v16 }
 0x12b   :  { %v167_v18 = vsel %vm162_vm3, %v166_v17, 0.0 }
 0x12e   :  { %168 = vadd.xlane.f32.xlu0 %v167_v18 }
 0x1b7   :  { %v165_v25 = vpop.xlane.xlu0 %164 }
 0x1b8   :  { %v170_v26 = vmul.f32 0.03125, %v165_v25 }
 0x1ba   :  { %v172_v28 = vmul.f32 %v170_v26, %v170_v26  ;;  %v175_v36 = vsub.f32 %v161_v15, %v170_v26 }
 0x1bb   :  { %v169_v27 = vpop.xlane.xlu0 %168 }
 0x1bc   :  { %v171_v29 = vmul.f32 0.03125, %v169_v27 }
 0x1be   :  { %v173_v30 = vsub.f32 %v171_v29, %v172_v28 }
 0x1c0   :  { %v174_v31 = vmax.f32 %v173_v30, 0.0 }
 0x1c2   :  { %v176_v32 = vadd.f32 1e-05, %v174_v31 }
 0x1c4   :  { %471 = vrsqrt.f32 %v176_v32 }
 0x1ce   :  { %v472_v37 = vpop.eup %471 }
 0x1cf   :  { %v178_v39 = vmul.f32 %v472_v37, %v175_v36 }
 0x1d1   :  { %v183_v40 = vmul.f32 %v182_v35, %v178_v39 }
 0x1d3   :  { %v188_v41 = vadd.f32 %v187_v38, %v183_v40 }
 0x1d5   :  { %433 = vmatmul.mubr.msk.f32.vlgmr.msra.gmra.mrb[0].mxu1 %vm162_vm3, %v188_v41 }
 0x2a8   :  { %v267_v44 = vpop.f32.mrb[0].mxu1 }
 0x2a9   :  { %v268_v45 = vadd.f32 %v267_v44, %v197_v43  ;;  %v434_v46 = vpop.f32.mrb[1].mxu1 }
 0x2ab   :  { %v272_v47 = vmul.f32 0.01, %v268_v45  ;;  %vm271_vm4 = vcmp.gt.f32.partialorder %v268_v45, 0.0 }
 0x2ad   :  { %v273_v48 = vsel %vm271_vm4, %v268_v45, %v272_v47 }
 0x2ae   :  { %v274_v49 = vsel %vm162_vm3, %v273_v48, 0.0  ;;  %v277_v50 = vmul.f32 %v273_v48, %v273_v48 }
 0x2af   :  { %275 = vadd.xlane.f32.xlu1 %v274_v49 }
 0x2b0   :  { %v278_v51 = vsel %vm162_vm3, %v277_v50, 0.0 }
 0x2b3   :  { %279 = vadd.xlane.f32.xlu1 %v278_v51 }
 0x33c   :  { %v276_v58 = vpop.xlane.xlu1 %275 }
 0x33d   :  { %v281_v59 = vmul.f32 0.03125, %v276_v58 }
 0x33f   :  { %v283_v61 = vmul.f32 %v281_v59, %v281_v59  ;;  %v286_v4 = vsub.f32 %v273_v48, %v281_v59 }
 0x340   :  { %v280_v60 = vpop.xlane.xlu1 %279 }
 0x341   :  { %v282_v62 = vmul.f32 0.03125, %v280_v60 }
 0x343   :  { %v284_v63 = vsub.f32 %v282_v62, %v283_v61 }
 0x345   :  { %v285_v1 = vmax.f32 %v284_v63, 0.0 }
 0x347   :  { %v287_v2 = vadd.f32 1e-05, %v285_v1 }
 0x349   :  { %473 = vrsqrt.f32 %v287_v2 }
 0x353   :  { %v474_v5 = vpop.eup %473 }
 0x354   :  { %v289_v7 = vmul.f32 %v474_v5, %v286_v4 }
 0x356   :  { %v294_v8 = vmul.f32 %v293_v3, %v289_v7 }
 0x358   :  { %v299_v0 = vadd.f32 %v298_v6, %v294_v8 }
 0x35a   :  { %444 = vmatmul.mubr.msk.f32.vlgmr.msra.gmra.mrb[2].mxu0 %vm162_vm3, %v299_v0 }
 0x42d   :  { %v378_v10 = vpop.f32.mrb[2].mxu0 }
 0x42e   :  { %v379_v11 = vadd.f32 %v402_v9, %v378_v10  ;;  %v445_v12 = vpop.f32.mrb[3].mxu0 }
 0x430   :  { %382 = vst [vmem:[#allocation10] sm:$0xff] %v379_v11 }
 0x431   :  { %574 = shalt.err (!%p571_p8)
}
 0x432   :  { %s575_s25 = scalar_lea.hbm %s735_s6, 128 }
 0x433   :  { %p576_p9 = scmp.ne.s32.totalorder %s735_s6, %s575_s25  ;;  %p579_p10 = scmp.lt.u32.totalorder %s575_s25, %s735_s6 }
 0x435   :  { %p581_p11 = pnand %p579_p10, %p576_p9 }
 0x437   :  { %584 = shalt.err (!%p581_p11)
}
 0x438   :  { %392 = dma.vmem_to_hbm [thread:$0]  %s390_s1, 128, %s735_s6, [#allocation4]  }
 0x439   :  { %591 = dma.done.wait [#allocation4], 128  }
 0x43a   :  { %592 = vsyncadd [#allocation4], 4294967168 }
 0x43b   :  { %396 = vsyncpa [#allocation3], 1 }
 0x43c   :  { %397 = vsyncpa [#allocation6], 1 }
 0x43d   :  { %398 = vsyncpa [#allocation9], 1 }
 0x43e   :  { %399 = vsyncpa [#allocation4], 1 }

</bundles_post_ra>
